<compile_context>
chip_gen: v6e
topology: v6e:2x2x1
jax: 0.10.0
libtpu: 0.0.40
codegen_flags: <defaults>
</compile_context>

<pallas_src>
import functools

import jax
import jax.numpy as jnp
from jax.experimental import pallas as pl
from jax.experimental.pallas import tpu as pltpu


# --------------------------------------------------------------------------
# Padded-size helpers (Mosaic pads the last dim to 128 lanes and the
# second-to-last dim to the dtype sublane multiple).
# --------------------------------------------------------------------------
def _round_up(x, m):
    return ((x + m - 1) // m) * m


def _sublane_multiple(dtype):
    itemsize = jnp.dtype(dtype).itemsize
    return max(8, 8 * (4 // max(itemsize, 1)))      # 8 (f32), 16 (bf16), 32 (i8)


def _padded_row_bytes_2d(width, dtype):
    # one batch row of a (TB, width) VMEM tile
    return _round_up(width, 128) * jnp.dtype(dtype).itemsize


def _padded_row_bytes_3d(l, d, dtype):
    # one batch row of a (TB, l, d) VMEM tile ((l, d) are the tiled dims)
    return (_round_up(l, _sublane_multiple(dtype))
            * _round_up(d, 128) * jnp.dtype(dtype).itemsize)


def _padded_block_bytes(shape, dtype):
    isize = jnp.dtype(dtype).itemsize
    dims = [int(s) for s in shape]
    dims[-1] = _round_up(dims[-1], 128)
    if len(dims) >= 2:
        dims[-2] = _round_up(dims[-2], _sublane_multiple(dtype))
    n = 1
    for s in dims:
        n *= s
    return n * isize


def _pick_tile_b(batch, per_row_padded_bytes, sub, *,
                 target_step_bytes=6 << 20, min_steps=4, max_tb=8192):
    """Batch tile: ~target_step_bytes of padded per-step input, multiple of the
    sublane group, capped so there are >= min_steps grid steps when the batch
    allows it (pipelining; megacore sharding of the 'parallel' axis on v7x)."""
    tb = (target_step_bytes // max(per_row_padded_bytes, 1)) // sub * sub
    tb = max(sub, tb)
    tb = min(tb, max(sub, _round_up(pl.cdiv(batch, min_steps), sub)))
    tb = min(tb, max_tb)
    if tb >= batch:
        return batch                                  # tiny batch: one full tile
    return tb


# --------------------------------------------------------------------------
# Kernel
# --------------------------------------------------------------------------
def _metadata_image_loss_kernel(meta_ref, w_ref, b_ref, img_ref, out_ref, *,
                                batch, tile_b, feat, lane_dense):
    # meta_ref: (TB, M)            w_ref: (D, M)    b_ref: (1, D)
    # img_ref : (TB, L*D) if lane_dense else (TB, L, D)
    # out_ref : (1, 1, 128) -> partial sum of per-example losses for this tile
    i = pl.program_id(0)

    # ---- Linear on the MXU: x @ W^T + b, weight in PyTorch (D, M) layout ----
    y = jax.lax.dot_general(
        meta_ref[...], w_ref[...],
        dimension_numbers=(((1,), (1,)), ((), ())),
        preferred_element_type=jnp.float32,
    )                                                   # (TB, D) f32
    y = y + b_ref[...].astype(jnp.float32)

    # ---- MaxPool1d(kernel_size=L): max over the sequence axis ----
    if lane_dense:
        img = img_ref[...]                              # (TB, L*D), lane-dense
        width = img.shape[1]
        # Fold 128-lane chunks (elementwise max, VPU; exact in native dtype).
        h = img[:, 0:128]
        for c in range(1, width // 128):
            h = jnp.maximum(h, img[:, c * 128:(c + 1) * 128])
        # Reduce the 128 // feat groups inside each vreg with XLU rotations.
        shift = 64
        while shift >= feat:
            h = jnp.maximum(h, pltpu.roll(h, shift, axis=1))
            shift //= 2
        pooled = h[:, :feat].astype(jnp.float32)        # (TB, D) f32
    else:
        # Fallback (D not a power-of-two divisor of 128, or L*D % 128 != 0).
        pooled = jnp.max(img_ref[...], axis=1).astype(jnp.float32)

    # ---- cosine similarity along features (torch eps = 1e-8) ----
    # Clamping each squared norm at eps^2 == clamping each norm at eps; this
    # differs from torch's documented max(||a||*||b||, eps) only when exactly
    # one norm is below 1e-8 (negligible), and matches _reference below.
    eps2 = jnp.float32(1e-16)
    dot = jnp.sum(y * pooled, axis=1, keepdims=True)    # (TB, 1)
    ny2 = jnp.sum(y * y, axis=1, keepdims=True)
    np2 = jnp.sum(pooled * pooled, axis=1, keepdims=True)
    cos = dot * jax.lax.rsqrt(jnp.maximum(ny2, eps2) * jnp.maximum(np2, eps2))
    per_row = 1.0 - cos                                 # (TB, 1)

    out_ref[...] = jnp.full(out_ref.shape, jnp.sum(per_row), dtype=out_ref.dtype)

    if batch % tile_b != 0:
        # Only the final (partial) tile pays for the iota/where. Padded rows
        # carry garbage, but the eps clamp keeps rsqrt finite and the mask is
        # applied AFTER the cosine, so the garbage is simply discarded.
        @pl.when(i == pl.num_programs(0) - 1)
        def _():
            row_ids = (jax.lax.broadcasted_iota(jnp.int32, (tile_b, 1), 0)
                       + i * tile_b)
            masked = jnp.where(row_ids < batch, per_row, jnp.float32(0.0))
            out_ref[...] = jnp.full(out_ref.shape, jnp.sum(masked),
                                    dtype=out_ref.dtype)


# --------------------------------------------------------------------------
# Wrapper
# --------------------------------------------------------------------------
def metadata_image_loss(metadata_embeddings, image_embeddings, weight, bias):
    """metadata_embeddings: (B, S, E); image_embeddings: (B, L, D);
    weight: (D, M) (PyTorch nn.Linear layout); bias: (D,). Returns scalar."""
    B = metadata_embeddings.shape[0]
    meta_flat = metadata_embeddings.reshape(B, -1)          # free view, (B, M)
    M = meta_flat.shape[1]
    L, D = image_embeddings.shape[1], image_embeddings.shape[2]
    b2 = bias.reshape(1, D)

    meta_dt, img_dt = meta_flat.dtype, image_embeddings.dtype
    flat_w = L * D
    # Lane-dense pooling path: flattened row is a whole number of 128-lane
    # chunks AND D tiles the 128 lanes evenly (any divisor of 128 is a pow2).
    lane_dense = (flat_w % 128 == 0) and (D <= 128) and (128 % D == 0)

    if lane_dense:
        img_in = image_embeddings.reshape(B, flat_w)        # free contiguous view
        img_row_bytes = _padded_row_bytes_2d(flat_w, img_dt)
    else:
        img_in = image_embeddings
        img_row_bytes = _padded_row_bytes_3d(L, D, img_dt)
    meta_row_bytes = _padded_row_bytes_2d(M, meta_dt)

    sub = max(_sublane_multiple(meta_dt), _sublane_multiple(img_dt))
    TB = _pick_tile_b(B, meta_row_bytes + img_row_bytes, sub)
    G = pl.cdiv(B, TB)

    # Padded, double-buffered VMEM footprint -> explicit scoped-VMEM request
    # (safe on v5e/v6e; <= 32 MiB keeps v7x's 64 MiB physical comfortable).
    meta_block = (TB, M)
    img_block = (TB, flat_w) if lane_dense else (TB, L, D)
    buf_bytes = (_padded_block_bytes(meta_block, meta_dt)
                 + _padded_block_bytes(img_block, img_dt))
    resident_bytes = (_padded_block_bytes((D, M), weight.dtype)
                      + _padded_block_bytes((1, D), bias.dtype)
                      + _padded_block_bytes((1, 1, 128), jnp.float32))
    footprint = 2 * (buf_bytes + resident_bytes)            # 2 pipeline buffers
    vmem_limit = int(min(max(2 * footprint + (2 << 20), 16 << 20), 32 << 20))

    # Advisory cost: large memory-bound region (dominant bytes = image stream).
    bytes_accessed = int(B * (M * jnp.dtype(meta_dt).itemsize
                              + flat_w * jnp.dtype(img_dt).itemsize)
                         + D * M * jnp.dtype(weight.dtype).itemsize
                         + D * jnp.dtype(bias.dtype).itemsize
                         + G * 128 * 4)
    cost = pl.CostEstimate(flops=int(2 * B * M * D + 8 * B * D),
                           transcendentals=int(B),
                           bytes_accessed=bytes_accessed)

    kernel = functools.partial(_metadata_image_loss_kernel,
                               batch=B, tile_b=TB, feat=D,
                               lane_dense=lane_dense)

    in_specs = [
        pl.BlockSpec((TB, M), lambda i: (i, 0)),            # metadata tile
        pl.BlockSpec((D, M), lambda i: (0, 0)),              # weight, VMEM-resident
        pl.BlockSpec((1, D), lambda i: (0, 0)),              # bias, VMEM-resident
    ]
    if lane_dense:
        # Dominant stream, lane-dense: no 32->128 lane padding in VMEM / vregs.
        # TODO(synk): sweep pipeline_mode=pl.Buffered(3) on this spec on HW.
        in_specs.append(pl.BlockSpec((TB, flat_w), lambda i: (i, 0)))
    else:
        in_specs.append(pl.BlockSpec((TB, L, D), lambda i: (i, 0, 0)))

    partials = pl.pallas_call(
        kernel,
        out_shape=jax.ShapeDtypeStruct((G, 1, 128), jnp.float32),
        grid=(G,),
        in_specs=in_specs,
        out_specs=pl.BlockSpec((1, 1, 128), lambda i: (i, 0, 0)),
        compiler_params=pltpu.CompilerParams(
            dimension_semantics=("parallel",),
            vmem_limit_bytes=vmem_limit,
        ),
        cost_estimate=cost,
    )(meta_flat, weight, b2, img_in)

    # Finish the mean over the TRUE batch size in the wrapper.
    return jnp.sum(partials[:, 0, 0]) / jnp.float32(B)


# --------------------------------------------------------------------------
# Pure-JAX reference (mirrors the PyTorch module)
# --------------------------------------------------------------------------
def _reference(metadata_embeddings, image_embeddings, weight, bias):
    B = metadata_embeddings.shape[0]
    x = metadata_embeddings.reshape(B, -1).astype(jnp.float32)
    y = x @ weight.T.astype(jnp.float32) + bias.astype(jnp.float32)
    pooled = jnp.max(image_embeddings, axis=1).astype(jnp.float32)
    eps = 1e-8
    cos = jnp.sum(y * pooled, axis=1) / (
        jnp.maximum(jnp.linalg.norm(y, axis=1), eps)
        * jnp.maximum(jnp.linalg.norm(pooled, axis=1), eps))
    return jnp.mean(1.0 - cos)


if __name__ == "__main__":
    # Small shapes consistent with the module:
    #   metadata_emb_size = S * E = 8 * 4 = 32, image_emb_size = 32, kernel_size = L = 8
    B, S, E = 2, 8, 4
    M = S * E            # metadata_emb_size
    D = 32               # image_emb_size
    L = 8                # kernel_size (MaxPool1d over the full sequence)

    key = jax.random.PRNGKey(0)
    k_meta, k_img, k_w, k_b, k_meta2, k_img2 = jax.random.split(key, 6)

    metadata_embeddings = jax.random.normal(k_meta, (B, S, E), dtype=jnp.float32)
    image_embeddings = jax.random.normal(k_img, (B, L, D), dtype=jnp.float32)

    # Deterministic "nn.Linear(metadata_emb_size, image_emb_size)" parameters.
    bound = 1.0 / jnp.sqrt(jnp.float32(M))
    weight = jax.random.uniform(k_w, (D, M), minval=-bound, maxval=bound,
                                dtype=jnp.float32)
    bias = jax.random.uniform(k_b, (D,), minval=-bound, maxval=bound,
                              dtype=jnp.float32)

    loss = metadata_image_loss(metadata_embeddings, image_embeddings, weight, bias)
    loss = jax.block_until_ready(loss)
    ref = _reference(metadata_embeddings, image_embeddings, weight, bias)
    assert jnp.allclose(loss, ref, atol=1e-5, rtol=1e-5), (loss, ref)

    # Also exercise the multi-step grid and the last-partial-tile masking path.
    B2 = 300
    meta2 = jax.random.normal(k_meta2, (B2, S, E), dtype=jnp.float32)
    img2 = jax.random.normal(k_img2, (B2, L, D), dtype=jnp.float32)
    loss2 = jax.block_until_ready(metadata_image_loss(meta2, img2, weight, bias))
    ref2 = _reference(meta2, img2, weight, bias)
    assert jnp.allclose(loss2, ref2, atol=1e-5, rtol=1e-5), (loss2, ref2)

    print("KERNEL_OK")
</pallas_src>

<mosaic_0001>
module attributes {stable_mosaic.version = 11 : i64} {
  func.func @_metadata_image_loss_kernel(%arg0: i32, %arg1: memref<2x32xf32, #tpu.memory_space<vmem>>, %arg2: memref<32x32xf32, #tpu.memory_space<vmem>>, %arg3: memref<1x32xf32, #tpu.memory_space<vmem>>, %arg4: memref<2x256xf32, #tpu.memory_space<vmem>>, %arg5: memref<1x1x128xf32, #tpu.memory_space<vmem>>) attributes {dimension_semantics = [#tpu.dimension_semantics<parallel>], iteration_bounds = array<i64: 1>, scalar_prefetch = 0 : i64, scratch_operands = 0 : i64, tpu.core_type = #tpu.core_type<tc>, window_params = [{transform_indices = @transform_0, window_bounds = array<i64: 2, 32>}, {pipeline_mode = #tpu.pipeline_mode<synchronous>, transform_indices = @transform_1, window_bounds = array<i64: 32, 32>}, {pipeline_mode = #tpu.pipeline_mode<synchronous>, transform_indices = @transform_2, window_bounds = array<i64: 1, 32>}, {transform_indices = @transform_3, window_bounds = array<i64: 2, 256>}, {transform_indices = @transform_4, window_bounds = array<i64: 1, 1, 128>}]} {
    %c0 = arith.constant 0 : index
    %c0_0 = arith.constant 0 : index
    %0 = vector.load %arg1[%c0, %c0_0] : memref<2x32xf32, #tpu.memory_space<vmem>>, vector<2x32xf32>
    %c0_1 = arith.constant 0 : index
    %c0_2 = arith.constant 0 : index
    %1 = vector.load %arg2[%c0_1, %c0_2] : memref<32x32xf32, #tpu.memory_space<vmem>>, vector<32x32xf32>
    %cst = arith.constant dense<0.000000e+00> : vector<2x32xf32>
    %2 = tpu.matmul %0, %1, %cst {dimension_numbers = #tpu.dot_dimension_numbers<[1], [1], [0], [0], [0, 0, 1, 0], [], []>} : vector<2x32xf32>, vector<32x32xf32>, vector<2x32xf32> -> vector<2x32xf32>
    %c0_3 = arith.constant 0 : index
    %c0_4 = arith.constant 0 : index
    %3 = vector.load %arg3[%c0_3, %c0_4] : memref<1x32xf32, #tpu.memory_space<vmem>>, vector<1x32xf32>
    %4 = vector.broadcast %3 : vector<1x32xf32> to vector<2x32xf32>
    %5 = arith.addf %2, %4 : vector<2x32xf32>
    %c0_5 = arith.constant 0 : index
    %c0_6 = arith.constant 0 : index
    %6 = vector.load %arg4[%c0_5, %c0_6] : memref<2x256xf32, #tpu.memory_space<vmem>>, vector<2x256xf32>
    %7 = vector.extract_strided_slice %6 {offsets = [0, 0], sizes = [2, 128], strides = [1, 1]} : vector<2x256xf32> to vector<2x128xf32>
    %8 = vector.extract_strided_slice %6 {offsets = [0, 128], sizes = [2, 128], strides = [1, 1]} : vector<2x256xf32> to vector<2x128xf32>
    %9 = arith.maximumf %7, %8 : vector<2x128xf32>
    %c64_i32 = arith.constant 64 : i32
    %10 = tpu.dynamic_rotate %9 by %c64_i32 dim 1 : vector<2x128xf32>, i32 -> vector<2x128xf32>
    %11 = arith.maximumf %9, %10 : vector<2x128xf32>
    %c32_i32 = arith.constant 32 : i32
    %12 = tpu.dynamic_rotate %11 by %c32_i32 dim 1 : vector<2x128xf32>, i32 -> vector<2x128xf32>
    %13 = arith.maximumf %11, %12 : vector<2x128xf32>
    %14 = vector.extract_strided_slice %13 {offsets = [0, 0], sizes = [2, 32], strides = [1, 1]} : vector<2x128xf32> to vector<2x32xf32>
    %15 = arith.mulf %5, %14 : vector<2x32xf32>
    %cst_7 = arith.constant dense<0.000000e+00> : vector<2xf32>
    %16 = vector.multi_reduction <add>, %15, %cst_7 [1] : vector<2x32xf32> to vector<2xf32>
    %17 = vector.shape_cast %16 : vector<2xf32> to vector<2x1xf32>
    %18 = arith.mulf %5, %5 : vector<2x32xf32>
    %cst_8 = arith.constant dense<0.000000e+00> : vector<2xf32>
    %19 = vector.multi_reduction <add>, %18, %cst_8 [1] : vector<2x32xf32> to vector<2xf32>
    %20 = vector.shape_cast %19 : vector<2xf32> to vector<2x1xf32>
    %21 = arith.mulf %14, %14 : vector<2x32xf32>
    %cst_9 = arith.constant dense<0.000000e+00> : vector<2xf32>
    %22 = vector.multi_reduction <add>, %21, %cst_9 [1] : vector<2x32xf32> to vector<2xf32>
    %23 = vector.shape_cast %22 : vector<2xf32> to vector<2x1xf32>
    %cst_10 = arith.constant 1.000000e-16 : f32
    %24 = vector.broadcast %cst_10 : f32 to vector<2x1xf32>
    %25 = arith.maximumf %20, %24 : vector<2x1xf32>
    %cst_11 = arith.constant 1.000000e-16 : f32
    %26 = vector.broadcast %cst_11 : f32 to vector<2x1xf32>
    %27 = arith.maximumf %23, %26 : vector<2x1xf32>
    %28 = arith.mulf %25, %27 : vector<2x1xf32>
    %29 = math.rsqrt %28 : vector<2x1xf32>
    %30 = arith.mulf %17, %29 : vector<2x1xf32>
    %cst_12 = arith.constant 1.000000e+00 : f32
    %31 = vector.broadcast %cst_12 : f32 to vector<2x1xf32>
    %32 = arith.subf %31, %30 : vector<2x1xf32>
    %33 = vector.shape_cast %32 : vector<2x1xf32> to vector<1x2x1xf32>
    %cst_13 = arith.constant dense<0.000000e+00> : vector<1xf32>
    %34 = vector.multi_reduction <add>, %33, %cst_13 [1, 2] : vector<1x2x1xf32> to vector<1xf32>
    %35 = vector.shape_cast %34 : vector<1xf32> to vector<1x1x1xf32>
    %36 = vector.extract %35[0, 0, 0] : f32 from vector<1x1x1xf32>
    %37 = vector.broadcast %36 : f32 to vector<1x1x128xf32>
    %c0_14 = arith.constant 0 : index
    %c0_15 = arith.constant 0 : index
    %c0_16 = arith.constant 0 : index
    %38 = vector.load %arg5[%c0_14, %c0_15, %c0_16] : memref<1x1x128xf32, #tpu.memory_space<vmem>>, vector<1x1x128xf32>
    tpu.vector_store %arg5[%c0_14, %c0_15, %c0_16], %37 {strides = array<i32>} : memref<1x1x128xf32, #tpu.memory_space<vmem>>, vector<1x1x128xf32>,
    return
  }
  func.func @transform_0(%arg0: i32) -> (i32, i32) {
    %c0_i32 = arith.constant 0 : i32
    %c0_i32_0 = arith.constant 0 : i32
    return %arg0, %c0_i32 : i32, i32
  }
  func.func @transform_1(%arg0: i32) -> (i32, i32) {
    %c0_i32 = arith.constant 0 : i32
    %c0_i32_0 = arith.constant 0 : i32
    %c0_i32_1 = arith.constant 0 : i32
    return %c0_i32, %c0_i32_0 : i32, i32
  }
  func.func @transform_2(%arg0: i32) -> (i32, i32) {
    %c0_i32 = arith.constant 0 : i32
    %c0_i32_0 = arith.constant 0 : i32
    %c0_i32_1 = arith.constant 0 : i32
    return %c0_i32, %c0_i32_0 : i32, i32
  }
  func.func @transform_3(%arg0: i32) -> (i32, i32) {
    %c0_i32 = arith.constant 0 : i32
    %c0_i32_0 = arith.constant 0 : i32
    return %arg0, %c0_i32 : i32, i32
  }
  func.func @transform_4(%arg0: i32) -> (i32, i32, i32) {
    %c0_i32 = arith.constant 0 : i32
    %c0_i32_0 = arith.constant 0 : i32
    %c0_i32_1 = arith.constant 0 : i32
    return %arg0, %c0_i32, %c0_i32_0 : i32, i32, i32
  }
}

</mosaic_0001>

<bundles_post_ra>
// kernel: tpu_custom_call.1
= control target key start
LH: loop header
LB: loop body
LE: loop exit
PB: predicated region body
PF: predicated region fallthrough
CT: control target
= control target key end

     0   :  { %9 = vsyncpa [#allocation3], 0  ;;  %s356_s0 = inlined_call_operand.hbm [shape: f32[2,32], index: 0, kind: input, shape index: {}]   ;;  %s357_s1 = inlined_call_operand.hbm [shape: f32[32,32], index: 1, kind: input, shape index: {}]   ;;  %s358_s2 = inlined_call_operand.vmem [shape: f32[1,32], index: 2, kind: input, shape index: {}]   ;;  %s359_s3 = inlined_call_operand.vmem [shape: f32[2,256], index: 3, kind: input, shape index: {}]   ;;  %s360_s4 = inlined_call_operand.hbm [shape: f32[1,1,128], index: 4, kind: output, shape index: {}]  }
   0x1   :  { %10 = vsyncpa [#allocation6], 0 }
   0x2   :  { %11 = vsyncpa [#allocation4], 0  ;;  %s302_s15 = smov [#allocation2]   ;;  %s303_s17 = smov [#allocation5]  }
   0x3   :  { %s18_s16 = sshll.u32 %s302_s15, 4  ;;  %s27_s18 = sshll.u32 %s303_s17, 4  ;;  %s19_s16 = int_to_ptr.vmem [resolvable:$true] %s18_s16  ;;  %s28_s18 = int_to_ptr.vmem [resolvable:$true] %s27_s18 }
   0x4   :  { %s244_s19 = scalar_lea.vmem %s19_s16, 32  ;;  %p249_p1 = scmp.lt.s32.totalorder %s19_s16, %s19_s16 }
   0x5   :  { %p245_p0 = scmp.ne.s32.totalorder %s19_s16, %s244_s19  ;;  %p250_p2 = scmp.lt.s32.totalorder %s244_s19, %s244_s19 }
   0x7   :  { %p251_p3 = por %p250_p2, %p249_p1 }
   0x9   :  { %p252_p4 = pnand %p251_p3, %p245_p0 }
   0xb   :  { %255 = shalt.err (!%p252_p4)
}
   0xc   :  { %21 = dma.hbm_to_vmem [thread:$0]  %s356_s0, 32, %s19_s16, [#allocation3]  }
   0xd   :  { %s264_s22 = scalar_lea.vmem %s28_s18, 512  ;;  %p269_p6 = scmp.lt.s32.totalorder %s28_s18, %s28_s18 }
   0xe   :  { %p265_p5 = scmp.ne.s32.totalorder %s28_s18, %s264_s22  ;;  %p270_p7 = scmp.lt.s32.totalorder %s264_s22, %s264_s22 }
  0x10   :  { %p271_p8 = por %p270_p7, %p269_p6 }
  0x12   :  { %p272_p9 = pnand %p271_p8, %p265_p5 }
  0x14   :  { %275 = shalt.err (!%p272_p9)
}
  0x15   :  { %s304_s23 = smov 128   ;;  %s305_s24 = smov 8  }
  0x16   :  { %33 = dma.hbm_to_vmem [thread:$0]  %s357_s1, 512, %s28_s18, [#allocation6], %s304_s23, %s304_s23, %s305_s24  }
  0x17   :  { %296 = dma.done.wait [#allocation3], 32  }
  0x18   :  { %297 = vsyncadd [#allocation3], 4294967264 }
  0x19   :  { %298 = dma.done.wait [#allocation6], 512  }
  0x1a   :  { %299 = vsyncadd [#allocation6], 4294966784  ;;  %v306_v0 = vmov 0.0   ;;  %vm307_vm0 = vmmov 0   ;;  %vm56_vm1 = vcmask 261120   ;;  %v48_v2 = vld [vmem:[#allocation5 + $0x18] sm:$0xff] }
  0x1b   :  { %212 = vmatprep.subr.mxu0 %v306_v0  ;;  %220 = vmatprep.mubr.msk.f32.mxu0 %vm307_vm0, %v306_v0  ;;  %v142_v1 = vld [vmem:[%s359_s3] sm:$0xf]  ;;  %s308_s1 = smov 64   ;;  %v46_v6 = vld [vmem:[#allocation5 + $0x8] sm:$0xff]  ;;  %v45_v7 = vld [vmem:[#allocation5] sm:$0xff]  ;;  %s309_s3 = smov 32  }
  0x1c   :  { %v144_v3 = vrot.slane %v142_v1, 2  ;;  %213 = vmatpush3.xpose.msk.msra.mxu0 %vm56_vm1, %v48_v2  ;;  %v47_v4 = vld [vmem:[#allocation5 + $0x10] sm:$0xff]  ;;  %v44_v8 = vld [vmem:[#allocation2] sm:$0x3]  ;;  %vm154_vm2 = vcmask 254976   ;;  %vm172_vm3 = vcmask 1024  }
  0x1d   :  { %214 = vmatprep.subr.mxu0 %v306_v0  ;;  %v201_v11 = vld [vmem:[%s358_s2] ss:$0 sm:$0xff]  ;;  %s310_s2 = smov [#allocation7]  }
  0x1e   :  { %v146_v5 = vmax.f32 %v142_v1, %v144_v3  ;;  %s191_s30 = sshll.u32 %s310_s2, 4  ;;  %s192_s30 = int_to_ptr.vmem [resolvable:$true] %s191_s30 }
  0x1f   :  { %s276_s6 = scalar_lea.vmem %s192_s30, 16  ;;  %s280_s7 = scalar_lea.vmem %s192_s30, 32 }
  0x20   :  { %147 = vrot.lane.b32.xlu0 %v146_v5, %s308_s1  ;;  %215 = vmatpush3.xpose.msk.msra.mxu0 %vm56_vm1, %v47_v4  ;;  %p277_p10 = scmp.ne.s32.totalorder %s192_s30, %s276_s6  ;;  %p281_p11 = scmp.lt.s32.totalorder %s192_s30, %s192_s30 }
  0x21   :  { %216 = vmatprep.subr.mxu0 %v306_v0  ;;  %p282_p12 = scmp.lt.s32.totalorder %s280_s7, %s276_s6 }
  0x23   :  { %p283_p13 = por %p282_p12, %p281_p11 }
  0x24   :  { %217 = vmatpush3.xpose.msk.msra.mxu0 %vm56_vm1, %v46_v6 }
  0x25   :  { %218 = vmatprep.subr.mxu0 %v306_v0  ;;  %p284_p0 = pnand %p283_p13, %p277_p10 }
  0x28   :  { %219 = vmatpush3.xpose.msk.msra.mxu0 %vm56_vm1, %v45_v7 }
  0x2b   :  { %221 = vmatmul.mubr.msk.f32.vlgmr.msra.gmra.mxu0 %vm56_vm1, %v44_v8 }
  0x92   :  { %v148_v9 = vpop.permute.xlu0 %147 }
  0x93   :  { %v149_v10 = vmax.f32 %v146_v5, %v148_v9 }
  0x95   :  { %150 = vrot.lane.b32.xlu0 %v149_v10, %s309_s3 }
  0xeb   :  { %v138_v12 = vpop.f32.mrf.mxu0 }
  0xec   :  { %v139_v13 = vadd.f32 %v201_v11, %v138_v12 }
  0xed   :  { %v222_v14 = vpop.f32.mrf.mxu0 }
  0xee   :  { %v158_v15 = vmul.f32 %v139_v13, %v139_v13 }
  0xf0   :  { %v159_v16 = vsel %vm154_vm2, %v158_v15, 0.0 }
  0xf1   :  { %160 = vadd.xlane.f32.xlu1 %v159_v16 }
 0x107   :  { %v151_v17 = vpop.permute.xlu0 %150 }
 0x108   :  { %v152_v18 = vmax.f32 %v149_v10, %v151_v17 }
 0x10a   :  { %v162_v19 = vmul.f32 %v152_v18, %v152_v18  ;;  %v153_v20 = vmul.f32 %v152_v18, %v139_v13 }
 0x10c   :  { %v163_v21 = vsel %vm154_vm2, %v162_v19, 0.0  ;;  %v155_v22 = vsel %vm154_vm2, %v153_v20, 0.0 }
 0x10d   :  { %164 = vadd.xlane.f32.xlu1 %v163_v21  ;;  %156 = vadd.xlane.f32.xlu0 %v155_v22 }
 0x17a   :  { %v161_v23 = vpop.xlane.xlu1 %160 }
 0x17b   :  { %v166_v25 = vmax.f32 %v161_v23, 1e-16 }
 0x196   :  { %v165_v24 = vpop.xlane.xlu1 %164  ;;  %v157_v29 = vpop.xlane.xlu0 %156 }
 0x197   :  { %v167_v26 = vmax.f32 %v165_v24, 1e-16 }
 0x199   :  { %v168_v27 = vmul.f32 %v167_v26, %v166_v25 }
 0x19b   :  { %234 = vrsqrt.f32 %v168_v27 }
 0x1a8   :  { %v235_v28 = vpop.eup %234 }
 0x1a9   :  { %v170_v30 = vmul.f32 %v235_v28, %v157_v29 }
 0x1ab   :  { %v171_v31 = vsub.f32 1.0, %v170_v30 }
 0x1ad   :  { %v173_v32 = vsel %vm172_vm3, %v171_v31, 0.0 }
 0x1ae   :  { %174 = vadd.xlane.f32.xlu1 %v173_v32 }
 0x237   :  { %v175_v33 = vpop.xlane.xlu1 %174 }
 0x238   :  { %v176_v34 = vrot.slane %v175_v33, 4 }
 0x23a   :  { %v177_v35 = vadd.f32 %v176_v34, %v175_v33 }
 0x23c   :  { %v178_v36 = vrot.slane %v177_v35, 2 }
 0x23e   :  { %v179_v37 = vadd.f32 %v178_v36, %v177_v35 }
 0x240   :  { %v180_v38 = vrot.slane %v179_v37, 1 }
 0x242   :  { %v181_v39 = vadd.f32 %v180_v38, %v179_v37 }
 0x244   :  { %223 = vpush %v181_v39 }
 0x275   :  { %s224_s5 = spop %223 }
 0x276   :  { %v183_v40 = vstv %s224_s5 }
 0x277   :  { %184 = vst [vmem:[#allocation7] sm:$0x1] %v183_v40 }
 0x278   :  { %287 = shalt.err (!%p284_p0)
}
 0x279   :  { %194 = dma.vmem_to_hbm [thread:$0]  %s192_s30, 16, %s360_s4, [#allocation4]  }
 0x27a   :  { %300 = dma.done.wait [#allocation4], 16  }
 0x27b   :  { %301 = vsyncadd [#allocation4], 4294967280 }
 0x27c   :  { %198 = vsyncpa [#allocation3], 1 }
 0x27d   :  { %199 = vsyncpa [#allocation6], 1 }
 0x27e   :  { %200 = vsyncpa [#allocation4], 1 }

</bundles_post_ra>
